<compile_context>
chip_gen: v7x
topology: tpu7x:2x2x1
jax: 0.10.0
libtpu: 0.0.40
codegen_flags: <defaults>
</compile_context>

<pallas_src>
import functools

import jax
import jax.numpy as jnp
from jax.experimental import pallas as pl
from jax.experimental.pallas import tpu as pltpu


# ----------------------------------------------------------------------------
# Kernel
# ----------------------------------------------------------------------------
def mlp_kernel(x_ref, w1_ref, b1_ref, w2_ref, b2_ref, o_ref):
    # Layer 1: Linear -> ReLU (dropout p=0.0 is identity; no batch norm).
    # MXU matmul with f32 accumulation; bias/ReLU epilogue in f32.
    h = jnp.dot(x_ref[...], w1_ref[...], preferred_element_type=jnp.float32)
    h = jnp.maximum(h + b1_ref[...], 0.0)
    # Layer 2 (plain_last=True -> no activation on the output layer).
    o = jnp.dot(h.astype(w2_ref.dtype), w2_ref[...],
                preferred_element_type=jnp.float32)
    o_ref[...] = (o + b2_ref[...]).astype(o_ref.dtype)


# ----------------------------------------------------------------------------
# Wrapper
# ----------------------------------------------------------------------------
def _round_up(x: int, m: int) -> int:
    return (x + m - 1) // m * m


@functools.partial(jax.jit, static_argnames=("block_m",))
def mlp_forward(x, w1, b1, w2, b2, *, block_m: int = 4096):
    """y = relu(x @ w1 + b1) @ w2 + b2, fused on-TPU.

    x:  [N, in_dim]
    w1: [in_dim, hidden]   b1: [hidden] or [1, hidden]
    w2: [hidden, out_dim]  b2: [out_dim] or [1, out_dim]
    """
    n, in_dim = x.shape
    hidden = w1.shape[1]
    out_dim = w2.shape[1]
    x_dtype = x.dtype

    # Weights/biases are tiny and VMEM-resident; cast weights to the compute
    # dtype (x.dtype), keep biases in f32 for the f32 epilogue.
    w1c = w1.astype(x_dtype)
    w2c = w2.astype(x_dtype)
    b1c = b1.reshape(1, hidden).astype(jnp.float32)
    b2c = b2.reshape(1, out_dim).astype(jnp.float32)

    # Pad the batch only to a multiple of 8 sublanes (and only when needed);
    # the tm-granularity remainder is handled by Pallas partial final blocks.
    n8 = _round_up(max(n, 8), 8)
    if n8 != n:
        x = jnp.zeros((n8, in_dim), x_dtype).at[:n].set(x)

    # --- Generation-aware VMEM budget (v7x: 64 MiB, v5e/v6e: 128 MiB). ---
    try:
        vmem_cap = int(pltpu.get_tpu_info().vmem_capacity_bytes)
    except Exception:
        vmem_cap = 64 * 1024 * 1024  # conservative fallback
    vmem_limit = int(min(vmem_cap * 3 // 4, 100 * 1024 * 1024))

    xb = jnp.dtype(x_dtype).itemsize
    weight_bytes = (in_dim * hidden + hidden * out_dim) * xb \
        + (hidden + out_dim) * 4
    # Double-buffered x/out tiles + h intermediate (f32) + its cast copy.
    per_row_bytes = 2 * (in_dim * xb + out_dim * xb) + hidden * (4 + xb)
    tile_budget = vmem_limit - 2 * weight_bytes - (2 << 20)
    tm_cap = max(8, (tile_budget // per_row_bytes) // 8 * 8)

    block_m8 = max(8, (block_m // 8) * 8)          # guard odd user block_m
    half = _round_up(pl.cdiv(n8, 2), 8)            # >=2 steps: v7x megacore
    tm = int(min(block_m8, tm_cap, half))

    grid = (pl.cdiv(n8, tm),)

    cost = pl.CostEstimate(
        flops=2 * n8 * (in_dim * hidden + hidden * out_dim),
        transcendentals=0,
        bytes_accessed=n8 * (in_dim + out_dim) * xb + weight_bytes,
    )

    out = pl.pallas_call(
        mlp_kernel,
        out_shape=jax.ShapeDtypeStruct((n8, out_dim), x_dtype),
        grid=grid,
        in_specs=[
            # x: streamed, one batch tile per grid step (natural feature
            # width; last dim == full array dim is legal even when < 128).
            pl.BlockSpec((tm, in_dim), lambda i: (i, 0)),
            # Weights / biases: constant index_map -> VMEM-resident.
            pl.BlockSpec((in_dim, hidden), lambda i: (0, 0)),
            pl.BlockSpec((1, hidden), lambda i: (0, 0)),
            pl.BlockSpec((hidden, out_dim), lambda i: (0, 0)),
            pl.BlockSpec((1, out_dim), lambda i: (0, 0)),
        ],
        out_specs=pl.BlockSpec((tm, out_dim), lambda i: (i, 0)),
        compiler_params=pltpu.CompilerParams(
            dimension_semantics=("parallel",),
            vmem_limit_bytes=vmem_limit,
        ),
        cost_estimate=cost,
    )(x, w1c, b1c, w2c, b2c)

    return out[:n]


# ----------------------------------------------------------------------------
# Parameter init (mirrors torch.nn.Linear.reset_parameters)
# ----------------------------------------------------------------------------
def init_linear(key, fan_in, fan_out):
    kw, kb = jax.random.split(key)
    bound = 1.0 / jnp.sqrt(jnp.float32(fan_in))
    w = jax.random.uniform(kw, (fan_in, fan_out), jnp.float32, -bound, bound)
    b = jax.random.uniform(kb, (1, fan_out), jnp.float32, -bound, bound)
    return w, b


if __name__ == "__main__":
    # Small shapes consistent with the module defaults (hidden_dim=16,
    # num_layers=2, plain_last=True).
    batch, in_dim, hidden_dim, output_dim = 8, 32, 16, 8

    key = jax.random.PRNGKey(0)
    kx, k1, k2, kx_big = jax.random.split(key, 4)

    x = jax.random.normal(kx, (batch, in_dim), jnp.float32)
    w1, b1 = init_linear(k1, in_dim, hidden_dim)
    w2, b2 = init_linear(k2, hidden_dim, output_dim)

    ref_fn = lambda xx: jnp.maximum(xx @ w1 + b1, 0.0) @ w2 + b2

    # --- Tiny batch (single tile). ---
    out = jax.block_until_ready(mlp_forward(x, w1, b1, w2, b2))
    assert out.shape == (batch, output_dim)
    assert jnp.allclose(out, ref_fn(x), atol=1e-5, rtol=1e-5)

    # --- Larger, non-8-multiple batch: exercises 8-row padding, the 2-step
    #     grid (v7x megacore split), and the partial final block. ---
    big_n = 2050
    x_big = jax.random.normal(kx_big, (big_n, in_dim), jnp.float32)
    out_big = jax.block_until_ready(mlp_forward(x_big, w1, b1, w2, b2))
    assert out_big.shape == (big_n, output_dim)
    assert jnp.allclose(out_big, ref_fn(x_big), atol=1e-5, rtol=1e-5)

    print("KERNEL_OK")
</pallas_src>

<mosaic_0001>
module attributes {stable_mosaic.version = 11 : i64} {
  func.func @mlp_kernel(%arg0: i32, %arg1: memref<8x32xf32, #tpu.memory_space<vmem>>, %arg2: memref<32x16xf32, #tpu.memory_space<vmem>>, %arg3: memref<1x16xf32, #tpu.memory_space<vmem>>, %arg4: memref<16x8xf32, #tpu.memory_space<vmem>>, %arg5: memref<1x8xf32, #tpu.memory_space<vmem>>, %arg6: memref<8x8xf32, #tpu.memory_space<vmem>>) attributes {dimension_semantics = [#tpu.dimension_semantics<parallel>], iteration_bounds = array<i64: 1>, scalar_prefetch = 0 : i64, scratch_operands = 0 : i64, tpu.core_type = #tpu.core_type<tc>, window_params = [{transform_indices = @transform_0, window_bounds = array<i64: 8, 32>}, {pipeline_mode = #tpu.pipeline_mode<synchronous>, transform_indices = @transform_1, window_bounds = array<i64: 32, 16>}, {pipeline_mode = #tpu.pipeline_mode<synchronous>, transform_indices = @transform_2, window_bounds = array<i64: 1, 16>}, {pipeline_mode = #tpu.pipeline_mode<synchronous>, transform_indices = @transform_3, window_bounds = array<i64: 16, 8>}, {pipeline_mode = #tpu.pipeline_mode<synchronous>, transform_indices = @transform_4, window_bounds = array<i64: 1, 8>}, {transform_indices = @transform_5, window_bounds = array<i64: 8, 8>}]} {
    %c0 = arith.constant 0 : index
    %c0_0 = arith.constant 0 : index
    %0 = vector.load %arg1[%c0, %c0_0] : memref<8x32xf32, #tpu.memory_space<vmem>>, vector<8x32xf32>
    %c0_1 = arith.constant 0 : index
    %c0_2 = arith.constant 0 : index
    %1 = vector.load %arg2[%c0_1, %c0_2] : memref<32x16xf32, #tpu.memory_space<vmem>>, vector<32x16xf32>
    %cst = arith.constant dense<0.000000e+00> : vector<8x16xf32>
    %2 = tpu.matmul %0, %1, %cst {dimension_numbers = #tpu.dot_dimension_numbers<[1], [0], [0], [1], [0, 0, 1, 1], [], []>} : vector<8x32xf32>, vector<32x16xf32>, vector<8x16xf32> -> vector<8x16xf32>
    %c0_3 = arith.constant 0 : index
    %c0_4 = arith.constant 0 : index
    %3 = vector.load %arg3[%c0_3, %c0_4] : memref<1x16xf32, #tpu.memory_space<vmem>>, vector<1x16xf32>
    %4 = vector.broadcast %3 : vector<1x16xf32> to vector<8x16xf32>
    %5 = arith.addf %2, %4 : vector<8x16xf32>
    %cst_5 = arith.constant 0.000000e+00 : f32
    %6 = vector.broadcast %cst_5 : f32 to vector<8x16xf32>
    %7 = arith.maximumf %5, %6 : vector<8x16xf32>
    %c0_6 = arith.constant 0 : index
    %c0_7 = arith.constant 0 : index
    %8 = vector.load %arg4[%c0_6, %c0_7] : memref<16x8xf32, #tpu.memory_space<vmem>>, vector<16x8xf32>
    %cst_8 = arith.constant dense<0.000000e+00> : vector<8x8xf32>
    %9 = tpu.matmul %7, %8, %cst_8 {dimension_numbers = #tpu.dot_dimension_numbers<[1], [0], [0], [1], [0, 0, 1, 1], [], []>} : vector<8x16xf32>, vector<16x8xf32>, vector<8x8xf32> -> vector<8x8xf32>
    %c0_9 = arith.constant 0 : index
    %c0_10 = arith.constant 0 : index
    %10 = vector.load %arg5[%c0_9, %c0_10] : memref<1x8xf32, #tpu.memory_space<vmem>>, vector<1x8xf32>
    %11 = vector.broadcast %10 : vector<1x8xf32> to vector<8x8xf32>
    %12 = arith.addf %9, %11 : vector<8x8xf32>
    %c0_11 = arith.constant 0 : index
    %c0_12 = arith.constant 0 : index
    %13 = vector.load %arg6[%c0_11, %c0_12] : memref<8x8xf32, #tpu.memory_space<vmem>>, vector<8x8xf32>
    tpu.vector_store %arg6[%c0_11, %c0_12], %12 {strides = array<i32>} : memref<8x8xf32, #tpu.memory_space<vmem>>, vector<8x8xf32>,
    return
  }
  func.func @transform_0(%arg0: i32) -> (i32, i32) {
    %c0_i32 = arith.constant 0 : i32
    %c0_i32_0 = arith.constant 0 : i32
    return %arg0, %c0_i32 : i32, i32
  }
  func.func @transform_1(%arg0: i32) -> (i32, i32) {
    %c0_i32 = arith.constant 0 : i32
    %c0_i32_0 = arith.constant 0 : i32
    %c0_i32_1 = arith.constant 0 : i32
    return %c0_i32, %c0_i32_0 : i32, i32
  }
  func.func @transform_2(%arg0: i32) -> (i32, i32) {
    %c0_i32 = arith.constant 0 : i32
    %c0_i32_0 = arith.constant 0 : i32
    %c0_i32_1 = arith.constant 0 : i32
    return %c0_i32, %c0_i32_0 : i32, i32
  }
  func.func @transform_3(%arg0: i32) -> (i32, i32) {
    %c0_i32 = arith.constant 0 : i32
    %c0_i32_0 = arith.constant 0 : i32
    %c0_i32_1 = arith.constant 0 : i32
    return %c0_i32, %c0_i32_0 : i32, i32
  }
  func.func @transform_4(%arg0: i32) -> (i32, i32) {
    %c0_i32 = arith.constant 0 : i32
    %c0_i32_0 = arith.constant 0 : i32
    %c0_i32_1 = arith.constant 0 : i32
    return %c0_i32, %c0_i32_0 : i32, i32
  }
  func.func @transform_5(%arg0: i32) -> (i32, i32) {
    %c0_i32 = arith.constant 0 : i32
    %c0_i32_0 = arith.constant 0 : i32
    return %arg0, %c0_i32 : i32, i32
  }
}

</mosaic_0001>

<bundles_post_ra>
// kernel: mlp_forward.1
= control target key start
LH: loop header
LB: loop body
LE: loop exit
PB: predicated region body
PF: predicated region fallthrough
CT: control target
= control target key end

     0   :  { %v274_v3 = vmov 0.0|0.0   ;;  %vm275_vm0 = vmmov 0   ;;  %v276_v6 = vmov 0.0   ;;  %s347_s0 = inlined_call_operand.vmem [shape: f32[8,32], index: 0, kind: input, shape index: {}]   ;;  %s348_s1 = inlined_call_operand.vmem [shape: f32[32,16], index: 1, kind: input, shape index: {}]   ;;  %s349_s2 = inlined_call_operand.vmem [shape: f32[1,16], index: 2, kind: input, shape index: {}]   ;;  %s350_s3 = inlined_call_operand.vmem [shape: f32[16,8], index: 3, kind: input, shape index: {}]   ;;  %s351_s4 = inlined_call_operand.vmem [shape: f32[1,8], index: 4, kind: input, shape index: {}]   ;;  %s352_s5 = inlined_call_operand.hbm [shape: f32[8,8], index: 5, kind: output, shape index: {}]  }
   0x1   :  { %v22_v0 = vld [vmem:[%s348_s1] sm:$0xff]  ;;  %v23_v1 = vld [vmem:[%s348_s1 + $0x8] sm:$0xff]  ;;  %v24_v2 = vld [vmem:[%s348_s1 + $0x10] sm:$0xff]  ;;  %237 = vmatprep.subr.bf16.mxu0 %v274_v3  ;;  %227 = vmatprep.mubr.msk.f32.mxu0 %vm275_vm0, %v276_v6 }
   0x2   :  { %v238_v4 = vpack.c.bf16 %v23_v1, %v22_v0  ;;  %v25_v5 = vld [vmem:[%s348_s1 + $0x18] sm:$0xff]  ;;  %243 = vmatprep.subr.bf16.mxu1 %v274_v3  ;;  %234 = vmatprep.mubr.msk.f32.mxu1 %vm275_vm0, %v276_v6 }
   0x3   :  { %10 = vsyncpa [#allocation3], 0  ;;  %v241_v7 = vpack.c.bf16 %v25_v5, %v24_v2  ;;  %v21_v8 = vld [vmem:[%s347_s0] sm:$0xff]  ;;  %vm33_vm1 = vcmask 261120   ;;  %v109_v10 = vld [vmem:[%s350_s3 + $0x8] sm:$0xff]  ;;  %vm117_vm2 = vcmask 130048  }
   0x4   :  { %239 = vmatpush3.bf16.msra.mxu0 %v238_v4  ;;  %v108_v9 = vld [vmem:[%s350_s3] sm:$0xff]  ;;  %s277_s9 = smov [#allocation2]   ;;  %vm191_vm3 = vcmask 64512  }
   0x5   :  { %240 = vmatprep.subr.bf16.mxu0 %v274_v3  ;;  %v244_v11 = vpack.c.bf16 %v109_v10, %v108_v9  ;;  %v207_v12 = vld [vmem:[%s349_s2] ss:$0 sm:$0xff]  ;;  %s199_s10 = sshll.u32 %s277_s9, 4  ;;  %s200_s10 = int_to_ptr.vmem [resolvable:$true] %s199_s10 }
   0x6   :  { %v209_v17 = vld [vmem:[%s351_s4] ss:$0 sm:$0xff]  ;;  %s250_s3 = scalar_lea.vmem %s200_s10, 128  ;;  %p255_p1 = scmp.lt.s32.totalorder %s200_s10, %s200_s10 }
   0x7   :  { %245 = vmatpush3.bf16.msra.mxu1 %v244_v11  ;;  %p251_p0 = scmp.ne.s32.totalorder %s200_s10, %s250_s3  ;;  %p256_p2 = scmp.lt.s32.totalorder %s250_s3, %s250_s3 }
   0x8   :  { %242 = vmatpush3.bf16.msra.mxu0 %v241_v7 }
   0x9   :  { %p257_p3 = por %p256_p2, %p255_p1 }
   0xb   :  { %228 = vmatmul.mubr.msk.f32.vlgmr.msra.gmra.mrb[0].mxu0 %vm33_vm1, %v21_v8  ;;  %p258_p4 = pnand %p257_p3, %p251_p0 }
  0xde   :  { %v103_v13 = vpop.f32.mrb[0].mxu0 }
  0xdf   :  { %v104_v14 = vadd.f32 %v207_v12, %v103_v13  ;;  %v229_v15 = vpop.f32.mrb[1].mxu0 }
  0xe1   :  { %v107_v16 = vmax.f32 %v104_v14, 0.0 }
  0xe3   :  { %235 = vmatmul.mubr.msk.f32.vlgmr.msra.gmra.mrb[0].mxu1 %vm117_vm2, %v107_v16 }
 0x1b6   :  { %v187_v18 = vpop.f32.mrb[0].mxu1 }
 0x1b7   :  { %v188_v19 = vadd.f32 %v209_v17, %v187_v18  ;;  %v236_v20 = vpop.f32.mrb[1].mxu1 }
 0x1b9   :  { %192 = vst.msk [vmem:[#allocation2] sm:$0xff] %vm191_vm3, %v188_v19 }
 0x1ba   :  { %261 = shalt.err (!%p258_p4)
}
 0x1bb   :  { %s262_s12 = scalar_lea.hbm %s352_s5, 128 }
 0x1bc   :  { %p263_p5 = scmp.ne.s32.totalorder %s352_s5, %s262_s12  ;;  %p266_p6 = scmp.lt.u32.totalorder %s262_s12, %s352_s5 }
 0x1be   :  { %p268_p7 = pnand %p266_p6, %p263_p5 }
 0x1c0   :  { %271 = shalt.err (!%p268_p7)
}
 0x1c1   :  { %202 = dma.vmem_to_hbm [thread:$0]  %s200_s10, 128, %s352_s5, [#allocation3]  }
 0x1c2   :  { %272 = dma.done.wait [#allocation3], 128  }
 0x1c3   :  { %273 = vsyncadd [#allocation3], 4294967168 }
 0x1c4   :  { %206 = vsyncpa [#allocation3], 1 }

</bundles_post_ra>
